<compile_context>
chip_gen: v5e
topology: v5e:2x2
jax: 0.10.0
libtpu: 0.0.40
codegen_flags: <defaults>
</compile_context>

<pallas_src>
import functools
import math

import jax
import jax.numpy as jnp
from jax.experimental import pallas as pl
from jax.experimental.pallas import tpu as pltpu

_NEG_INF = -1e30


def _round_up(x: int, m: int) -> int:
    return ((x + m - 1) // m) * m


# ---------------------------------------------------------------------------
# Pallas kernel: one (batch*head, q-tile, kv-tile) grid step of flash attention
# ---------------------------------------------------------------------------
def _flash_sdpa_kernel(q_ref, k_ref, v_ref, o_ref, m_sc, l_sc, acc_sc, *,
                       scale, kv_len, mask_kv, matmul_dtype):
    kv_idx = pl.program_id(2)
    blk_k = k_ref.shape[1]

    @pl.when(kv_idx == 0)
    def _init():
        m_sc[...] = jnp.full(m_sc.shape, -jnp.inf, dtype=m_sc.dtype)
        l_sc[...] = jnp.zeros(l_sc.shape, dtype=l_sc.dtype)
        acc_sc[...] = jnp.zeros(acc_sc.shape, dtype=acc_sc.dtype)

    q = q_ref[0]          # (Tq, Dp)
    k = k_ref[0]          # (Tk, Dp)
    v = v_ref[0]          # (Tk, Dvp)

    # Apply the softmax scale to Q (Tq*D elements), not to the scores (Tq*Tk).
    # `if scale:` matches the PyTorch module's truthiness check exactly.
    if scale:
        q = q * scale

    if matmul_dtype is not None:
        q = q.astype(matmul_dtype)
        k = k.astype(matmul_dtype)
        v = v.astype(matmul_dtype)

    # s = q @ k^T as a last-dim contraction -> MXU directly, no XLU transpose.
    s = jax.lax.dot_general(q, k, (((1,), (1,)), ((), ())),
                            preferred_element_type=jnp.float32)   # (Tq, Tk)

    if mask_kv:
        col = kv_idx * blk_k + jax.lax.broadcasted_iota(jnp.int32, s.shape, 1)
        s = jnp.where(col < kv_len, s, _NEG_INF)

    # Online softmax (flash) accumulator update, all in f32.
    m_prev = m_sc[...]
    m_new = jnp.maximum(m_prev, jnp.max(s, axis=-1, keepdims=True))
    alpha = jnp.exp(m_prev - m_new)
    p = jnp.exp(s - m_new)

    l_sc[...] = alpha * l_sc[...] + jnp.sum(p, axis=-1, keepdims=True)
    acc_sc[...] = alpha * acc_sc[...] + jnp.dot(
        p.astype(v.dtype), v, preferred_element_type=jnp.float32)
    m_sc[...] = m_new

    @pl.when(kv_idx == pl.num_programs(2) - 1)
    def _finalize():
        l = l_sc[...]
        inv_l = pl.reciprocal(l, approx=True)       # EUP slot, nearly free
        inv_l = inv_l * (2.0 - l * inv_l)           # one Newton step -> f32 accurate
        o_ref[0] = (acc_sc[...] * inv_l).astype(o_ref.dtype)


# ---------------------------------------------------------------------------
# Wrapper: ScaledDotProductAttention.forward (Q, K, V, scale) -> context
# ---------------------------------------------------------------------------
def scaled_dot_product_attention(Q, K, V, scale=None, *,
                                 block_q=256, block_k=256, matmul_dtype=None):
    """Q: (B, Lq, D), K: (B, Lk, D), V: (B, Lk, Dv) -> context (B, Lq, Dv)."""
    B, Lq, D = Q.shape
    Bk, Lk, Dk = K.shape
    Bv, Lkv, Dv = V.shape
    assert (Bk, Dk) == (B, D) and (Bv, Lkv) == (B, Lk)

    # Lane-dense feature dims (multiple of 128); sublane-aligned seq tiles.
    Dp = _round_up(D, 128)
    Dvp = _round_up(Dv, 128)
    Tq = min(block_q, _round_up(Lq, 8))
    Tk = min(block_k, _round_up(Lk, 8))
    Lq_p = _round_up(Lq, Tq)
    Lk_p = _round_up(Lk, Tk)

    q = Q if (Lq_p == Lq and Dp == D) else jnp.pad(Q, ((0, 0), (0, Lq_p - Lq), (0, Dp - D)))
    k = K if (Lk_p == Lk and Dp == D) else jnp.pad(K, ((0, 0), (0, Lk_p - Lk), (0, Dp - D)))
    v = V if (Lk_p == Lk and Dvp == Dv) else jnp.pad(V, ((0, 0), (0, Lk_p - Lk), (0, Dvp - Dv)))

    grid = (B, Lq_p // Tq, Lk_p // Tk)

    kernel = functools.partial(
        _flash_sdpa_kernel,
        scale=scale, kv_len=Lk, mask_kv=(Lk_p != Lk), matmul_dtype=matmul_dtype)

    # VMEM budget for the chosen tiles (double-buffered in/out + scratch),
    # with headroom; capped so it is valid on all generations (incl. v7x 64MiB).
    in_b = q.dtype.itemsize
    out_b = Q.dtype.itemsize
    est = (2 * (Tq * Dp + Tk * Dp + Tk * Dvp) * in_b    # double-buffered inputs
           + 2 * Tq * Dvp * out_b                        # double-buffered output
           + (Tq * Dvp + 2 * Tq) * 4                     # f32 accumulators
           + 2 * Tq * Tk * 4)                            # score / prob temporaries
    vmem_limit = int(min(48 * 2**20, max(32 * 2**20, 4 * est)))

    out = pl.pallas_call(
        kernel,
        out_shape=jax.ShapeDtypeStruct((B, Lq_p, Dvp), Q.dtype),
        grid_spec=pltpu.PrefetchScalarGridSpec(
            num_scalar_prefetch=0,
            grid=grid,
            in_specs=[
                pl.BlockSpec((1, Tq, Dp), lambda b, qi, ki: (b, qi, 0)),
                pl.BlockSpec((1, Tk, Dp), lambda b, qi, ki: (b, ki, 0)),
                pl.BlockSpec((1, Tk, Dvp), lambda b, qi, ki: (b, ki, 0)),
            ],
            out_specs=pl.BlockSpec((1, Tq, Dvp), lambda b, qi, ki: (b, qi, 0)),
            scratch_shapes=[
                pltpu.VMEM((Tq, 1), jnp.float32),     # running max  m
                pltpu.VMEM((Tq, 1), jnp.float32),     # running sum  l
                pltpu.VMEM((Tq, Dvp), jnp.float32),   # output accumulator
            ],
        ),
        compiler_params=pltpu.CompilerParams(
            dimension_semantics=("parallel", "parallel", "arbitrary"),
            vmem_limit_bytes=vmem_limit),
    )(q, k, v)

    if Lq_p != Lq or Dvp != Dv:
        out = out[:, :Lq, :Dv]
    return out


# ---------------------------------------------------------------------------
# Full MultiHeadAttention forward (projections / residual / LayerNorm in JAX,
# attention core in Pallas).
# TODO(synk): fuse the output projection + residual + LayerNorm epilogue into a
# Pallas kernel if profiling shows the XLA ops around the attention core matter.
# ---------------------------------------------------------------------------
def init_mha_params(key, dim_model, num_head, dtype=jnp.float32):
    assert dim_model % num_head == 0
    ks = jax.random.split(key, 8)

    def lin(kw, kb, din, dout):
        w = jax.random.normal(kw, (din, dout), dtype) * (din ** -0.5)
        b = jax.random.normal(kb, (dout,), dtype) * 0.02
        return w, b

    wq, bq = lin(ks[0], ks[1], dim_model, dim_model)
    wk, bk = lin(ks[2], ks[3], dim_model, dim_model)
    wv, bv = lin(ks[4], ks[5], dim_model, dim_model)
    wo, bo = lin(ks[6], ks[7], dim_model, dim_model)
    return {
        "wq": wq, "bq": bq, "wk": wk, "bk": bk, "wv": wv, "bv": bv,
        "wo": wo, "bo": bo,
        "ln_w": jnp.ones((dim_model,), dtype), "ln_b": jnp.zeros((dim_model,), dtype),
    }


def mha_forward(params, x, num_head, attn_fn):
    """Mirrors MultiHeadAttention.forward (dropout p=0.0 == identity)."""
    B, L, Dm = x.shape
    dh = Dm // num_head

    q = x @ params["wq"] + params["bq"]
    k = x @ params["wk"] + params["bk"]
    v = x @ params["wv"] + params["bv"]

    # Same row-major view as torch: (B, L, H*dh) -> (B*H, L, dh)
    q = q.reshape(B * num_head, -1, dh)
    k = k.reshape(B * num_head, -1, dh)
    v = v.reshape(B * num_head, -1, dh)

    scale = dh ** (-0.5)
    ctx = attn_fn(q, k, v, scale)
    ctx = ctx.reshape(B, -1, dh * num_head)

    out = ctx @ params["wo"] + params["bo"]
    out = out + x                                  # dropout(p=0) is identity
    mu = jnp.mean(out, axis=-1, keepdims=True)
    var = jnp.mean((out - mu) ** 2, axis=-1, keepdims=True)
    out = (out - mu) * jax.lax.rsqrt(var + 1e-5)
    return out * params["ln_w"] + params["ln_b"]


# ---------------------------------------------------------------------------
# Pure-JAX references
# ---------------------------------------------------------------------------
def _sdpa_reference(Q, K, V, scale=None):
    attn = jnp.einsum("bqd,bkd->bqk", Q, K)
    if scale:
        attn = attn * scale
    attn = jax.nn.softmax(attn, axis=-1)
    return jnp.einsum("bqk,bkd->bqd", attn, V)


if __name__ == "__main__":
    key = jax.random.PRNGKey(0)
    k1, k2, k3, k4, k5 = jax.random.split(key, 5)

    # --- Test 1: standalone tiled SDPA with non-divisible seq length --------
    # Exercises Lq/Lk tiling, online softmax across 3 kv tiles, kv masking of
    # padded columns, and lane padding of the feature dims (64 -> 128).
    B, Lq, Lk, D = 2, 136, 136, 64
    Q = jax.random.normal(k1, (B, Lq, D), dtype=jnp.float32)
    K = jax.random.normal(k2, (B, Lk, D), dtype=jnp.float32)
    V = jax.random.normal(k3, (B, Lk, D), dtype=jnp.float32)
    scale = 1.0 / math.sqrt(D)

    out = scaled_dot_product_attention(Q, K, V, scale, block_q=64, block_k=64)
    out = jax.block_until_ready(out)
    ref = _sdpa_reference(Q, K, V, scale)
    assert out.shape == ref.shape
    assert jnp.allclose(out, ref, atol=2e-4, rtol=2e-4), "SDPA mismatch vs reference"

    # --- Test 2: full MultiHeadAttention forward (small module-like shapes) --
    B2, L2, dim_model, num_head = 2, 8, 32, 4
    x = jax.random.normal(k4, (B2, L2, dim_model), dtype=jnp.float32)
    params = init_mha_params(k5, dim_model, num_head)

    y = mha_forward(params, x, num_head,
                    attn_fn=lambda q, k, v, s: scaled_dot_product_attention(q, k, v, s))
    y = jax.block_until_ready(y)
    y_ref = mha_forward(params, x, num_head, attn_fn=_sdpa_reference)
    assert y.shape == y_ref.shape == (B2, L2, dim_model)
    assert jnp.allclose(y, y_ref, atol=2e-4, rtol=2e-4), "MHA mismatch vs reference"

    print("KERNEL_OK")
</pallas_src>

<mosaic_0001>
module attributes {stable_mosaic.version = 11 : i64} {
  func.func @_flash_sdpa_kernel(%arg0: i32, %arg1: i32, %arg2: i32, %arg3: memref<1x64x128xf32, #tpu.memory_space<vmem>>, %arg4: memref<1x64x128xf32, #tpu.memory_space<vmem>>, %arg5: memref<1x64x128xf32, #tpu.memory_space<vmem>>, %arg6: memref<1x64x128xf32, #tpu.memory_space<vmem>>, %arg7: memref<64x1xf32, #tpu.memory_space<vmem>>, %arg8: memref<64x1xf32, #tpu.memory_space<vmem>>, %arg9: memref<64x128xf32, #tpu.memory_space<vmem>>) attributes {dimension_semantics = [#tpu.dimension_semantics<parallel>, #tpu.dimension_semantics<parallel>, #tpu.dimension_semantics<arbitrary>], iteration_bounds = array<i64: 2, 3, 3>, scalar_prefetch = 0 : i64, scratch_operands = 3 : i64, tpu.core_type = #tpu.core_type<tc>, window_params = [{transform_indices = @transform_0, window_bounds = array<i64: 1, 64, 128>}, {transform_indices = @transform_1, window_bounds = array<i64: 1, 64, 128>}, {transform_indices = @transform_2, window_bounds = array<i64: 1, 64, 128>}, {transform_indices = @transform_3, window_bounds = array<i64: 1, 64, 128>}]} {
    %c0_i32 = arith.constant 0 : i32
    %0 = arith.cmpi eq, %arg2, %c0_i32 : i32
    %1 = arith.extui %0 : i1 to i32
    %c0_i32_0 = arith.constant 0 : i32
    %2 = arith.cmpi ne, %1, %c0_i32_0 : i32
    scf.if %2 {
      %cst_27 = arith.constant 0xFF800000 : f32
      %45 = vector.broadcast %cst_27 : f32 to vector<64x1xf32>
      %c0_28 = arith.constant 0 : index
      %c0_29 = arith.constant 0 : index
      %46 = vector.load %arg7[%c0_28, %c0_29] : memref<64x1xf32, #tpu.memory_space<vmem>>, vector<64x1xf32>
      tpu.vector_store %arg7[%c0_28, %c0_29], %45 {strides = array<i32>} : memref<64x1xf32, #tpu.memory_space<vmem>>, vector<64x1xf32>,
      %cst_30 = arith.constant 0.000000e+00 : f32
      %47 = vector.broadcast %cst_30 : f32 to vector<64x1xf32>
      %c0_31 = arith.constant 0 : index
      %c0_32 = arith.constant 0 : index
      %48 = vector.load %arg8[%c0_31, %c0_32] : memref<64x1xf32, #tpu.memory_space<vmem>>, vector<64x1xf32>
      tpu.vector_store %arg8[%c0_31, %c0_32], %47 {strides = array<i32>} : memref<64x1xf32, #tpu.memory_space<vmem>>, vector<64x1xf32>,
      %cst_33 = arith.constant 0.000000e+00 : f32
      %49 = vector.broadcast %cst_33 : f32 to vector<64x128xf32>
      %c0_34 = arith.constant 0 : index
      %c0_35 = arith.constant 0 : index
      %50 = vector.load %arg9[%c0_34, %c0_35] : memref<64x128xf32, #tpu.memory_space<vmem>>, vector<64x128xf32>
      tpu.vector_store %arg9[%c0_34, %c0_35], %49 {strides = array<i32>} : memref<64x128xf32, #tpu.memory_space<vmem>>, vector<64x128xf32>,
    } else {
    }
    %c0 = arith.constant 0 : index
    %c0_1 = arith.constant 0 : index
    %c0_2 = arith.constant 0 : index
    %3 = vector.load %arg3[%c0, %c0_1, %c0_2] : memref<1x64x128xf32, #tpu.memory_space<vmem>>, vector<1x64x128xf32>
    %4 = vector.shape_cast %3 : vector<1x64x128xf32> to vector<64x128xf32>
    %c0_3 = arith.constant 0 : index
    %c0_4 = arith.constant 0 : index
    %c0_5 = arith.constant 0 : index
    %5 = vector.load %arg4[%c0_3, %c0_4, %c0_5] : memref<1x64x128xf32, #tpu.memory_space<vmem>>, vector<1x64x128xf32>
    %6 = vector.shape_cast %5 : vector<1x64x128xf32> to vector<64x128xf32>
    %c0_6 = arith.constant 0 : index
    %c0_7 = arith.constant 0 : index
    %c0_8 = arith.constant 0 : index
    %7 = vector.load %arg5[%c0_6, %c0_7, %c0_8] : memref<1x64x128xf32, #tpu.memory_space<vmem>>, vector<1x64x128xf32>
    %8 = vector.shape_cast %7 : vector<1x64x128xf32> to vector<64x128xf32>
    %cst = arith.constant 1.250000e-01 : f32
    %9 = vector.broadcast %cst : f32 to vector<64x128xf32>
    %10 = arith.mulf %4, %9 : vector<64x128xf32>
    %cst_9 = arith.constant dense<0.000000e+00> : vector<64x64xf32>
    %11 = tpu.matmul %10, %6, %cst_9 {dimension_numbers = #tpu.dot_dimension_numbers<[1], [1], [0], [0], [0, 0, 1, 0], [], []>} : vector<64x128xf32>, vector<64x128xf32>, vector<64x64xf32> -> vector<64x64xf32>
    %c64_i32 = arith.constant 64 : i32
    %12 = arith.muli %arg2, %c64_i32 : i32
    %13 = tpu.iota {dimensions = array<i32: 1>} : vector<64x64xi32>
    %14 = vector.broadcast %12 : i32 to vector<64x64xi32>
    %15 = arith.addi %14, %13 : vector<64x64xi32>
    %c136_i32 = arith.constant 136 : i32
    %16 = vector.broadcast %c136_i32 : i32 to vector<64x64xi32>
    %17 = arith.cmpi slt, %15, %16 : vector<64x64xi32>
    %cst_10 = arith.constant -1.000000e+30 : f32
    %18 = vector.broadcast %cst_10 : f32 to vector<64x64xf32>
    %19 = arith.select %17, %11, %18 : vector<64x64xi1>, vector<64x64xf32>
    %c0_11 = arith.constant 0 : index
    %c0_12 = arith.constant 0 : index
    %20 = vector.load %arg7[%c0_11, %c0_12] : memref<64x1xf32, #tpu.memory_space<vmem>>, vector<64x1xf32>
    %cst_13 = arith.constant dense<0xFF800000> : vector<64xf32>
    %21 = vector.multi_reduction <maximumf>, %19, %cst_13 [1] : vector<64x64xf32> to vector<64xf32>
    %22 = vector.shape_cast %21 : vector<64xf32> to vector<64x1xf32>
    %23 = arith.maximumf %20, %22 : vector<64x1xf32>
    %24 = arith.subf %20, %23 : vector<64x1xf32>
    %25 = math.exp %24 : vector<64x1xf32>
    %26 = vector.broadcast %23 : vector<64x1xf32> to vector<64x64xf32>
    %27 = arith.subf %19, %26 : vector<64x64xf32>
    %28 = math.exp %27 : vector<64x64xf32>
    %c0_14 = arith.constant 0 : index
    %c0_15 = arith.constant 0 : index
    %29 = vector.load %arg8[%c0_14, %c0_15] : memref<64x1xf32, #tpu.memory_space<vmem>>, vector<64x1xf32>
    %30 = arith.mulf %25, %29 : vector<64x1xf32>
    %cst_16 = arith.constant dense<0.000000e+00> : vector<64xf32>
    %31 = vector.multi_reduction <add>, %28, %cst_16 [1] : vector<64x64xf32> to vector<64xf32>
    %32 = vector.shape_cast %31 : vector<64xf32> to vector<64x1xf32>
    %33 = arith.addf %30, %32 : vector<64x1xf32>
    %c0_17 = arith.constant 0 : index
    %c0_18 = arith.constant 0 : index
    %34 = vector.load %arg8[%c0_17, %c0_18] : memref<64x1xf32, #tpu.memory_space<vmem>>, vector<64x1xf32>
    tpu.vector_store %arg8[%c0_17, %c0_18], %33 {strides = array<i32>} : memref<64x1xf32, #tpu.memory_space<vmem>>, vector<64x1xf32>,
    %c0_19 = arith.constant 0 : index
    %c0_20 = arith.constant 0 : index
    %35 = vector.load %arg9[%c0_19, %c0_20] : memref<64x128xf32, #tpu.memory_space<vmem>>, vector<64x128xf32>
    %36 = vector.broadcast %25 : vector<64x1xf32> to vector<64x128xf32>
    %37 = arith.mulf %36, %35 : vector<64x128xf32>
    %cst_21 = arith.constant dense<0.000000e+00> : vector<64x128xf32>
    %38 = tpu.matmul %28, %8, %cst_21 {dimension_numbers = #tpu.dot_dimension_numbers<[1], [0], [0], [1], [0, 0, 1, 1], [], []>} : vector<64x64xf32>, vector<64x128xf32>, vector<64x128xf32> -> vector<64x128xf32>
    %39 = arith.addf %37, %38 : vector<64x128xf32>
    %c0_22 = arith.constant 0 : index
    %c0_23 = arith.constant 0 : index
    %40 = vector.load %arg9[%c0_22, %c0_23] : memref<64x128xf32, #tpu.memory_space<vmem>>, vector<64x128xf32>
    tpu.vector_store %arg9[%c0_22, %c0_23], %39 {strides = array<i32>} : memref<64x128xf32, #tpu.memory_space<vmem>>, vector<64x128xf32>,
    %c0_24 = arith.constant 0 : index
    %c0_25 = arith.constant 0 : index
    %41 = vector.load %arg7[%c0_24, %c0_25] : memref<64x1xf32, #tpu.memory_space<vmem>>, vector<64x1xf32>
    tpu.vector_store %arg7[%c0_24, %c0_25], %23 {strides = array<i32>} : memref<64x1xf32, #tpu.memory_space<vmem>>, vector<64x1xf32>,
    %c2_i32 = arith.constant 2 : i32
    %42 = arith.cmpi eq, %arg2, %c2_i32 : i32
    %43 = arith.extui %42 : i1 to i32
    %c0_i32_26 = arith.constant 0 : i32
    %44 = arith.cmpi ne, %43, %c0_i32_26 : i32
    scf.if %44 {
      %c0_27 = arith.constant 0 : index
      %c0_28 = arith.constant 0 : index
      %45 = vector.load %arg8[%c0_27, %c0_28] : memref<64x1xf32, #tpu.memory_space<vmem>>, vector<64x1xf32>
      %46 = tpu.reciprocal %45 {approx = true} : vector<64x1xf32> -> vector<64x1xf32>
      %47 = arith.mulf %45, %46 : vector<64x1xf32>
      %cst_29 = arith.constant 2.000000e+00 : f32
      %48 = vector.broadcast %cst_29 : f32 to vector<64x1xf32>
      %49 = arith.subf %48, %47 : vector<64x1xf32>
      %50 = arith.mulf %46, %49 : vector<64x1xf32>
      %c0_30 = arith.constant 0 : index
      %c0_31 = arith.constant 0 : index
      %51 = vector.load %arg9[%c0_30, %c0_31] : memref<64x128xf32, #tpu.memory_space<vmem>>, vector<64x128xf32>
      %52 = vector.broadcast %50 : vector<64x1xf32> to vector<64x128xf32>
      %53 = arith.mulf %51, %52 : vector<64x128xf32>
      %c0_32 = arith.constant 0 : index
      %c0_33 = arith.constant 0 : index
      %c0_34 = arith.constant 0 : index
      %54 = vector.load %arg6[%c0_32, %c0_33, %c0_34] : memref<1x64x128xf32, #tpu.memory_space<vmem>>, vector<1x64x128xf32>
      %55 = vector.shape_cast %54 : vector<1x64x128xf32> to vector<64x128xf32>
      %56 = vector.shape_cast %53 : vector<64x128xf32> to vector<1x64x128xf32>
      tpu.vector_store %arg6[%c0_32, %c0_33, %c0_34], %56 {strides = array<i32>} : memref<1x64x128xf32, #tpu.memory_space<vmem>>, vector<1x64x128xf32>,
    } else {
    }
    return
  }
  func.func @transform_0(%arg0: i32, %arg1: i32, %arg2: i32) -> (i32, i32, i32) {
    %c0_i32 = arith.constant 0 : i32
    %c0_i32_0 = arith.constant 0 : i32
    return %arg0, %arg1, %c0_i32 : i32, i32, i32
  }
  func.func @transform_1(%arg0: i32, %arg1: i32, %arg2: i32) -> (i32, i32, i32) {
    %c0_i32 = arith.constant 0 : i32
    %c0_i32_0 = arith.constant 0 : i32
    return %arg0, %arg2, %c0_i32 : i32, i32, i32
  }
  func.func @transform_2(%arg0: i32, %arg1: i32, %arg2: i32) -> (i32, i32, i32) {
    %c0_i32 = arith.constant 0 : i32
    %c0_i32_0 = arith.constant 0 : i32
    return %arg0, %arg2, %c0_i32 : i32, i32, i32
  }
  func.func @transform_3(%arg0: i32, %arg1: i32, %arg2: i32) -> (i32, i32, i32) {
    %c0_i32 = arith.constant 0 : i32
    %c0_i32_0 = arith.constant 0 : i32
    return %arg0, %arg1, %c0_i32 : i32, i32, i32
  }
}

</mosaic_0001>

<bundles_post_ra>
// kernel: tpu_custom_call.1
= control target key start
LH: loop header
LB: loop body
LE: loop exit
PB: predicated region body
PF: predicated region fallthrough
CT: control target
= control target key end

     0   :  { %s2043_s0 = inlined_call_operand.hbm [shape: f32[2,192,128], index: 0, kind: input, shape index: {}]   ;;  %s2044_s1 = inlined_call_operand.hbm [shape: f32[2,192,128], index: 1, kind: input, shape index: {}]   ;;  %s2045_s2 = inlined_call_operand.hbm [shape: f32[2,192,128], index: 2, kind: input, shape index: {}]   ;;  %s2046_s3 = inlined_call_operand.hbm [shape: f32[2,192,128], index: 3, kind: output, shape index: {}]  }
   0x1   :  { %2069 = sst [smem:[#allocation30_spill]] %s2044_s1 }
   0x2   :  { %2070 = sst [smem:[#allocation31_spill]] %s2045_s2 }
   0x3   :  { %2071 = sst [smem:[#allocation32_spill]] %s2046_s3 }
   0x4   :  { %8 = vsyncpa [#allocation6], 0 }
   0x5   :  { %10 = vsyncpa [#allocation6 + $0x1], 0 }
   0x6   :  { %11 = vsyncpa [#allocation9], 0 }
   0x7   :  { %13 = vsyncpa [#allocation9 + $0x1], 0 }
   0x8   :  { %14 = vsyncpa [#allocation7], 0 }
   0x9   :  { %16 = vsyncpa [#allocation7 + $0x1], 0  ;;  %s1533_s12 = smov 0   ;;  %s1535_s13 = smov 0  }
   0xa   :  { %s1537_s14 = smov 0   ;;  %s1539_s15 = smov 0  }
   0xb   :  { %s1541_s16 = smov 0   ;;  %s1543_s17 = smov 0  }
   0xc   :  { %s1545_s18 = smov 0   ;;  %s1547_s19 = smov 0  }
   0xd   :  { %s1549_s20 = smov 0   ;;  %s1551_s21 = smov 0  }
   0xe   :  { %s1553_s22 = smov 0   ;;  %s1555_s23 = smov 0  }
   0xf   :  { %s1557_s24 = smov 0  }
  0x10 LB: > { %2072 = sst [smem:[#allocation15_spill]] %s1459_s13  ;;  %s1597_s25 = sadd.s32 4294967295, %s1503_s24   ;;  %s1503_s24 = sphi %s1557_s24, %s22_s24   ;;  %s1499_s23 = sphi %s1555_s23, %s2133_s23   ;;  %s1495_s22 = sphi %s1553_s22, %s2123_s22   ;;  %s1491_s21 = sphi %s1551_s21, %s2132_s21   ;;  %s1487_s20 = sphi %s1549_s20, %s2131_s20   ;;  %s1483_s19 = sphi %s1547_s19, %s2122_s19   ;;  %s1479_s18 = sphi %s1545_s18, %s2130_s18   ;;  %s1475_s17 = sphi %s1543_s17, %s2129_s17   ;;  %s1471_s16 = sphi %s1541_s16, %s2128_s16   ;;  %s1467_s15 = sphi %s1539_s15, %s2127_s15   ;;  %s1463_s14 = sphi %s1537_s14, %s2126_s14   ;;  %s1459_s13 = sphi %s1535_s13, %s2125_s13   ;;  %s1455_s12 = sphi %s1533_s12, %s2119_s12  }
  0x11   : > { %2073 = sst [smem:[#allocation16_spill]] %s1467_s15  ;;  %s34_s26 = sadd.s32 1, %s1491_s21 }
  0x12   : > { %2074 = sst [smem:[#allocation17_spill]] %s1471_s16  ;;  %p1600_p0 = scmp.ge.s32.totalorder %s34_s26, 3 }
  0x13   : > { %2075 = sst [smem:[#allocation18_spill]] %s1479_s18  ;;  %p58_p1 = scmp.eq.s32.totalorder %s1503_s24, 0 }
  0x14   : > { %2076 = sst [smem:[#allocation19_spill]] %s1483_s19  ;;  %p64_p2 = scmp.eq.s32.totalorder %s1597_s25, 0 }
  0x15   : > { %2077 = sst [smem:[#allocation20_spill]] %s1487_s20  ;;  %s2135_s26 = smov (%p1600_p0, %s34_s26), 0 }
  0x16   : > { %2078 = sst [smem:[#allocation21_spill]] %s1495_s22  ;;  %p85_p3 = scmp.ne.s32.totalorder %s1463_s14, %s1459_s13 }
  0x17   : > { %2079 = sst [smem:[#allocation22_spill]] %s1597_s25  ;;  %p91_p4 = scmp.ne.s32.totalorder %s1459_s13, %s1455_s12 }
  0x18   : > { %p1617_p5 = por %p85_p3, %p58_p1  ;;  %p1103_p7 = scmp.lt.s32.totalorder %s1503_s24, 18 }
  0x19   : > { %p1623_p6 = por %p91_p4, %p64_p2  ;;  %s2052_s5 = smul.u32 24, %s1499_s23 }
  0x1a   : > { %s195_s6 = sand.u32 1, %s1503_s24   ;;  %s197_s7 = sand.u32 1, %s1463_s14  }
  0x1b   : > { %s2082_s4 = scalar_select %p1623_p6, 1, 0 }
  0x1c   : > { %s1034_s8 = sshll.u32 %s197_s7, 6  ;;  %s1035_s9 = sshll.u32 %s1491_s21, 3 }
  0x1d   : > { %2083 = sst [smem:[#allocation23_spill]] %s2082_s4  ;;  %s204_s10 = sadd.s32 %s2052_s5, %s1035_s9 }
  0x1e   : > { %s1036_s11 = sshll.u32 %s204_s10, 3  ;;  %s199_s12 = scalar_lea.vmem [#allocation8], %s1034_s8 }
  0x1f   : > { %s209_s29 = sshll.u32 %s199_s12, 4  ;;  %s2084_s1 = sld [smem:[#allocation30_spill]]  ;;  %s210_s29 = int_to_ptr.vmem [resolvable:$true] %s209_s29 }
  0x20   : > { %p1641_p8 = pnand %p1103_p7, %p1617_p5  ;;  %s2086_s2 = sld [smem:[#allocation31_spill]] }
  0x21   : > { %s1648_s28 = scalar_lea.sflag [#allocation9], %s195_s6  ;;  %s2050_s30 = smov 8  }
  0x22   : > { %s223_s6 = scalar_lea.vmem [#allocation10], %s1034_s8  ;;  %p1040_p9 = scmp.ge.s32.totalorder %s1503_s24, 1 }
  0x23   : > { %s1660_s9 = sshll.u32 %s223_s6, 4  ;;  %p241_p10 = scmp.lt.s32.totalorder %s1503_s24, 19  ;;  %s234_s9 = int_to_ptr.vmem [resolvable:$true] %s1660_s9 }
  0x24   : > { %p57_p12 = scmp.ne.s32.totalorder %s1475_s17, %s1471_s16  ;;  %p63_p13 = scmp.ne.s32.totalorder %s1471_s16, %s1467_s15 }
  0x25   : > { %s206_s20 = scalar_lea.hbm %s2084_s1, %s1036_s11  ;;  %p1664_p11 = pnand %p1040_p9, %p241_p10 }
  0x26   : > { %s207_s19 = sshll.u32 %s206_s20, 4  ;;  %s230_s3 = scalar_lea.hbm %s2086_s2, %s1036_s11  ;;  %s208_s19 = int_to_ptr.hbm [resolvable:$true] %s207_s19 }
  0x27   : > { %s2048_s20 = smov 128   ;;  %s231_s11 = sshll.u32 %s230_s3, 4  ;;  %s1658_s11 = int_to_ptr.hbm [resolvable:$true] %s231_s11 }
  0x28   : > { %1095 = dma.hbm_to_vmem [thread:$0]  (!%p1641_p8), %s208_s19, 1024, %s210_s29, %s1648_s28, %s2048_s20, %s2048_s20, %s2050_s30  }
  0x29   : > { %s2087_s10 = scalar_select %p1664_p11, 1, 0 }
  0x2a   : > { %s1028_s19 = sadd.s32 4294967294, %s1503_s24   ;;  %s37_s29 = sadd.s32 1, %s1495_s22 }
  0x2b   : > { %2088 = sst [smem:[#allocation24_spill]] %s2087_s10  ;;  %s50_s3 = sadd.s32 1, %s1475_s17 }
  0x2c   : > { %s2137_s29 = smov (!%p1600_p0, %s37_s29), %s1495_s22  ;;  %p145_p4 = scmp.eq.s32.totalorder %s1597_s25, 17 }
  0x2d   : > { %p39_p3 = scmp.ge.s32.totalorder %s2137_s29, 3  ;;  %p1681_p5 = por %p58_p1, %p57_p12 }
  0x2e   : > { %p1690_p9 = por %p64_p2, %p63_p13  ;;  %s2093_s27 = sadd.s32 1, %s1499_s23 }
  0x2f   : > { %s2139_s29 = smov (%p39_p3, %s2137_s29), 0  ;;  %s2141_s27 = smov (!%p39_p3, %s2093_s27), %s1499_s23 }
  0x30   : > { %s2090_s6 = scalar_select %p1690_p9, 1, 0 }
  0x31   : > { %2092 = sst [smem:[#allocation26_spill]] %s2139_s29  ;;  %s46_s20 = ssub.s32 %s1495_s22, %s2139_s29 }
  0x32   : > { %2091 = sst [smem:[#allocation25_spill]] %s2090_s6  ;;  %p1701_p0 = por %p145_p4, %p57_p12 }
  0x33   : > { %p43_p1 = scmp.ge.s32.totalorder %s2141_s27, 2  ;;  %p151_p10 = scmp.eq.s32.totalorder %s1028_s19, 17 }
  0x34   : > { %s2094_s30 = scalar_select %p1701_p0, 1, 0 }
  0x35   : > { %s171_s5 = sand.u32 1, %s1475_s17   ;;  %s1032_s12 = sshll.u32 %s1495_s22, 3 }
  0x36   : > { %2095 = sst [smem:[#allocation27_spill]] %s2094_s30  ;;  %s2143_s27 = smov (%p43_p1, %s2141_s27), 0 }
  0x37   : > { %2096 = sst [smem:[#allocation28_spill]] %s2143_s27  ;;  %p1712_p2 = por %p151_p10, %p63_p13 }
  0x38   : > { %s45_s2 = ssub.s32 %s1499_s23, %s2143_s27  ;;  %s1031_s29 = sshll.u32 %s171_s5, 6 }
  0x39   : > { %s2097_s1 = scalar_select %p1712_p2, 1, 0 }
  0x3a   : > { %s47_s18 = sor.u32 %s46_s20, %s45_s2  ;;  %s2099_s4 = ssub.s32 %s1491_s21, %s2135_s26 }
  0x3b   : > { %2098 = sst [smem:[#allocation29_spill]] %s2097_s1  ;;  %s75_s30 = sor.u32 %s2099_s4, %s45_s2 }
  0x3c   : > { %p48_p12 = scmp.eq.s32.totalorder %s47_s18, 0  ;;  %p76_p3 = scmp.eq.s32.totalorder %s75_s30, 0 }
  0x3d   : > { %s2100_s19 = smul.u32 24, %s1499_s23  ;;  %s2101_s13 = sadd.s32 1, %s1463_s14 }
  0x3e   : > { %s1724_s15 = scalar_select %p48_p12, %s1475_s17, %s50_s3  }
  0x3f   : > { %s180_s22 = sadd.s32 %s2100_s19, %s1032_s12  ;;  %s175_s6 = scalar_lea.vmem [#allocation5], %s1031_s29 }
  0x40   : > { %s1729_s25 = scalar_select %p76_p3, %s1463_s14, %s2101_s13  }
  0x41   : > { %s1033_s1 = sshll.u32 %s180_s22, 3  ;;  %s185_s27 = sshll.u32 %s175_s6, 4  ;;  %s186_s27 = int_to_ptr.vmem [resolvable:$true] %s185_s27 }
  0x42   : > { %s182_s20 = scalar_lea.hbm %s2043_s0, %s1033_s1  ;;  %p1090_p13 = pnand %p1103_p7, %p1681_p5 }
  0x43   : > { %s183_s2 = sshll.u32 %s182_s20, 4  ;;  %s172_s18 = scalar_lea.sflag [#allocation6], %s171_s5  ;;  %s184_s2 = int_to_ptr.hbm [resolvable:$true] %s183_s2 }
  0x44   : > { %s2102_s4 = smov 8   ;;  %s2103_s30 = smov 128  }
  0x45   : > { %1092 = dma.hbm_to_vmem [thread:$0]  (!%p1090_p13), %s184_s2, 1024, %s186_s27, %s172_s18, %s2103_s30, %s2103_s30, %s2102_s4  }
  0x46   : > { %1098 = dma.hbm_to_vmem [thread:$0]  (!%p1641_p8), %s1658_s11, 1024, %s234_s9, %s1648_s28, %s2103_s30, %s2103_s30, %s2102_s4  }
  0x47   : > { %245 = sbr.rel (%p1664_p11) target bundleno = 905 (0x389), region = 32  ;;  %s2105_s1 = sld [smem:[#allocation17_spill]] (!%p1664_p11) }
  0x4d   : > { %s1752_s22 = sand.u32 1, %s2105_s1  }
  0x4e   : > { %s1041_s12 = sshll.u32 %s1752_s22, 6  ;;  %s248_s5 = scalar_lea.sflag [#allocation6], %s1752_s22 }
  0x4f   : > { %s1756_s10 = scalar_lea.vmem [#allocation5], %s1041_s12 }
  0x50   : > { %1442 = dma.done.wait (%p1690_p9), %s248_s5, 1024  }
  0x51   : > { %1444 = vsyncadd (%p1690_p9), %s248_s5, 4294966272  ;;  %s2107_s7 = sld [smem:[#allocation22_spill]] }
  0x52   : > { %s2108_s28 = sld [smem:[#allocation15_spill]] }
  0x57   : > { %s257_s9 = sand.u32 1, %s2107_s7  }
  0x58   : > { %s259_s29 = sand.u32 1, %s2108_s28   ;;  %s258_s8 = scalar_lea.sflag [#allocation9], %s257_s9 }
  0x59   : > { %s1042_s3 = sshll.u32 %s259_s29, 6 }
  0x5a   : > { %s1764_s6 = scalar_lea.vmem [#allocation8], %s1042_s3 }
  0x5b   : > { %1446 = dma.done.wait (%p1623_p6), %s258_s8, 2048  }
  0x5c   : > { %1448 = vsyncadd (%p1623_p6), %s258_s8, 4294965248  ;;  %s1770_s27 = scalar_lea.vmem [#allocation10], %s1042_s3  ;;  %s1772_s19 = scalar_lea.vmem [#allocation11], %s1041_s12 }
  0x5d   : > { %s2110_s20 = sld [smem:[#allocation18_spill]] }
  0x63   : > { %p1045_p7 = scmp.ne.s32.totalorder %s2110_s20, 0 }
  0x65   : > { %312 = sbr.rel (%p1045_p7) target bundleno = 131 (0x83), region = 48 }
  0x6a   : > { %vm313_vm0 = vcmask 7168   ;;  %v1507_v0 = vmov -inf   ;;  %v1508_v1 = vmov 0.0  }
  0x6b   : > { %314 = vst.msk [vmem:[#allocation2] sm:$0xff] %vm313_vm0, %v1507_v0 }
  0x6c   : > { %315 = vst.msk [vmem:[#allocation2 + $0x8] sm:$0xff] %vm313_vm0, %v1507_v0 }
  0x6d   : > { %316 = vst.msk [vmem:[#allocation2 + $0x10] sm:$0xff] %vm313_vm0, %v1507_v0 }
  0x6e   : > { %317 = vst.msk [vmem:[#allocation2 + $0x18] sm:$0xff] %vm313_vm0, %v1507_v0 }
  0x6f   : > { %318 = vst.msk [vmem:[#allocation2 + $0x20] sm:$0xff] %vm313_vm0, %v1507_v0 }
  0x70   : > { %319 = vst.msk [vmem:[#allocation2 + $0x28] sm:$0xff] %vm313_vm0, %v1507_v0 }
  0x71   : > { %320 = vst.msk [vmem:[#allocation2 + $0x30] sm:$0xff] %vm313_vm0, %v1507_v0 }
  0x72   : > { %321 = vst.msk [vmem:[#allocation2 + $0x38] sm:$0xff] %vm313_vm0, %v1507_v0 }
  0x73   : > { %322 = vst.msk [vmem:[#allocation3] sm:$0xff] %vm313_vm0, %v1508_v1 }
  0x74   : > { %323 = vst.msk [vmem:[#allocation3 + $0x8] sm:$0xff] %vm313_vm0, %v1508_v1 }
  0x75   : > { %324 = vst.msk [vmem:[#allocation3 + $0x10] sm:$0xff] %vm313_vm0, %v1508_v1 }
  0x76   : > { %325 = vst.msk [vmem:[#allocation3 + $0x18] sm:$0xff] %vm313_vm0, %v1508_v1 }
  0x77   : > { %326 = vst.msk [vmem:[#allocation3 + $0x20] sm:$0xff] %vm313_vm0, %v1508_v1 }
  0x78   : > { %327 = vst.msk [vmem:[#allocation3 + $0x28] sm:$0xff] %vm313_vm0, %v1508_v1 }
  0x79   : > { %328 = vst.msk [vmem:[#allocation3 + $0x30] sm:$0xff] %vm313_vm0, %v1508_v1 }
  0x7a   : > { %329 = vst.msk [vmem:[#allocation3 + $0x38] sm:$0xff] %vm313_vm0, %v1508_v1 }
  0x7b   : > { %330 = vst [vmem:[#allocation4 + $0x30] sm:$0xff] %v1508_v1 }
  0x7c   : > { %331 = vst [vmem:[#allocation4] sm:$0xff] %v1508_v1 }
  0x7d   : > { %332 = vst [vmem:[#allocation4 + $0x18] sm:$0xff] %v1508_v1 }
  0x7e   : > { %333 = vst [vmem:[#allocation4 + $0x10] sm:$0xff] %v1508_v1 }
  0x7f   : > { %334 = vst [vmem:[#allocation4 + $0x8] sm:$0xff] %v1508_v1 }
  0x80   : > { %335 = vst [vmem:[#allocation4 + $0x20] sm:$0xff] %v1508_v1 }
  0x81   : > { %336 = vst [vmem:[#allocation4 + $0x28] sm:$0xff] %v1508_v1 }
  0x82   : > { %337 = vst [vmem:[#allocation4 + $0x38] sm:$0xff] %v1508_v1 }
  0x83 PF: > { %v353_v2 = vld [vmem:[%s1764_s6 + $0x38] sm:$0xff]  ;;  %v352_v3 = vld [vmem:[%s1764_s6 + $0x30] sm:$0xff]  ;;  %v351_v4 = vld [vmem:[%s1764_s6 + $0x28] sm:$0xff]  ;;  %s2111_s2 = sld [smem:[#allocation18_spill]]  ;;  %v412_v26 = vlaneseq  ;;  %vm433_vm2 = vcmask 523264   ;;  %v1509_v54 = vmov 0  }
  0x84   : > { %378 = vmatpush.xpose.msra.mxu0 %v353_v2  ;;  %1061 = vmatpush.xpose.msra.mxu2 %v353_v2  ;;  %v350_v5 = vld [vmem:[%s1764_s6 + $0x20] sm:$0xff]  ;;  %v349_v6 = vld [vmem:[%s1764_s6 + $0x18] sm:$0xff]  ;;  %v348_v7 = vld [vmem:[%s1764_s6 + $0x10] sm:$0xff]  ;;  %vm602_vm3 = vcmask 7168  }
  0x85   : > { %v347_v8 = vld [vmem:[%s1764_s6 + $0x8] sm:$0xff]  ;;  %v338_v9 = vld [vmem:[%s1756_s10] sm:$0xff]  ;;  %v341_v10 = vld [vmem:[%s1756_s10 + $0x18] sm:$0xff]  ;;  %v413_v27 = vand.u32 127, %v412_v26  ;;  %1217 = vset.pattern.permute.xlu2 %v1509_v54  ;;  %1218 = vset.pattern.permute.xlu0 %v1509_v54 }
  0x86   : > { %v346_v11 = vld [vmem:[%s1764_s6] sm:$0xff]  ;;  %v362_v12 = vmul.f32 0.125, %v338_v9  ;;  %v365_v13 = vmul.f32 0.125, %v341_v10  ;;  %v339_v14 = vld [vmem:[%s1756_s10 + $0x8] sm:$0xff]  ;;  %v340_v19 = vld [vmem:[%s1756_s10 + $0x10] sm:$0xff]  ;;  %1219 = vset.pattern.permute.xlu1 %v1509_v54 }
  0x87   : > { %v342_v15 = vld [vmem:[%s1756_s10 + $0x20] sm:$0xff]  ;;  %v363_v16 = vmul.f32 0.125, %v339_v14  ;;  %v343_v18 = vld [vmem:[%s1756_s10 + $0x28] sm:$0xff]  ;;  %v364_v21 = vmul.f32 0.125, %v340_v19  ;;  %v344_v22 = vld [vmem:[%s1756_s10 + $0x30] sm:$0xff] }
  0x88   : > { %379 = vmatpush.xpose.msra.mxu0 %v352_v3  ;;  %1062 = vmatpush.xpose.msra.mxu2 %v352_v3  ;;  %v366_v17 = vmul.f32 0.125, %v342_v15  ;;  %v367_v20 = vmul.f32 0.125, %v343_v18  ;;  %v368_v23 = vmul.f32 0.125, %v344_v22  ;;  %v345_v24 = vld [vmem:[%s1756_s10 + $0x38] sm:$0xff]  ;;  %v1848_v55 = vld [vmem:[#allocation2] sm:$0xff]  ;;  %v426_v60 = vld [vmem:[#allocation2 + $0x8] sm:$0xff] }
  0x89   : > { %v369_v25 = vmul.f32 0.125, %v345_v24  ;;  %s1046_s18 = sshll.u32 %s2111_s2, 6  ;;  %v1852_v58 = vld [vmem:[#allocation2 + $0x18] sm:$0xff]  ;;  %v429_v0 = vld [vmem:[#allocation2 + $0x20] sm:$0xff]  ;;  %v427_v3 = vld [vmem:[#allocation2 + $0x10] sm:$0xff]  ;;  %p1055_p6 = scmp.ne.s32.totalorder %s2111_s2, 2 }
  0x8a   : > { %v414_v28 = vstv %s1046_s18  ;;  %v1861_v9 = vld [vmem:[#allocation2 + $0x28] sm:$0xff]  ;;  %v361_v18 = vld [vmem:[%s1770_s27 + $0x38] sm:$0xff]  ;;  %v360_v19 = vld [vmem:[%s1770_s27 + $0x30] sm:$0xff] }
  0x8b   : > { %v415_v29 = vadd.s32 %v414_v28, %v413_v27  ;;  %699 = vmatpush.msra.mxu1 %v361_v18  ;;  %1069 = vmatpush.msra.mxu3 %v361_v18  ;;  %v1884_v22 = vld [vmem:[#allocation2 + $0x38] sm:$0xff] }
  0x8c   : > { %380 = vmatpush.xpose.msra.mxu0 %v351_v4  ;;  %1063 = vmatpush.xpose.msra.mxu2 %v351_v4 }
  0x8d   : > { %vm416_vm1 = vcmp.lt.s32.totalorder %v415_v29, 136  ;;  %700 = vmatpush.msra.mxu1 %v360_v19  ;;  %1070 = vmatpush.msra.mxu3 %v360_v19 }
  0x90   : > { %381 = vmatpush.xpose.msra.mxu0 %v350_v5  ;;  %1064 = vmatpush.xpose.msra.mxu2 %v350_v5 }
  0x94   : > { %382 = vmatpush.xpose.msra.mxu0 %v349_v6  ;;  %1065 = vmatpush.xpose.msra.mxu2 %v349_v6 }
  0x98   : > { %383 = vmatpush.xpose.msra.mxu0 %v348_v7  ;;  %1066 = vmatpush.xpose.msra.mxu2 %v348_v7 }
  0x9c   : > { %384 = vmatpush.xpose.msra.mxu0 %v347_v8  ;;  %1067 = vmatpush.xpose.msra.mxu2 %v347_v8  ;;  %v1859_v8 = vld [vmem:[#allocation2 + $0x30] sm:$0xff] }
  0xa0   : > { %385 = vmatpush.xpose.msra.mxu0 %v346_v11  ;;  %1068 = vmatpush.xpose.msra.mxu2 %v346_v11 }
  0xa3   : > { %386 = vmatmul.f32.vlgmr.msra.gmra.mxu0 %v362_v12  ;;  %395 = vmatmul.f32.vlgmr.msra.gmra.mxu2 %v365_v13 }
  0xab   : > { %389 = vmatmul.f32.gmra.mxu0 %v363_v16  ;;  %398 = vmatmul.f32.gmra.mxu2 %v366_v17 }
  0xb3   : > { %401 = vmatmul.f32.gmra.mxu2 %v367_v20  ;;  %392 = vmatmul.f32.gmra.mxu0 %v364_v21 }
  0xbb   : > { %404 = vmatmul.f32.gmra.mxu2 %v368_v23 }
  0xc3   : > { %407 = vmatmul.f32.gmra.mxu2 %v369_v25 }
 0x120   : > { %v387_v30 = vpop.f32.mrf.mxu0 }
 0x121   : > { %v1809_v31 = vsel %vm416_vm1, %v387_v30, -1e+30 }
 0x122   : > { %v434_v32 = vsel %vm433_vm2, %v1809_v31, -inf }
 0x123   : > { %435 = vmax.xlane.f32.xlu0 %v434_v32 }
 0x126   : > { %v396_v33 = vpop.f32.mrf.mxu2 }
 0x127   : > { %v1814_v34 = vsel %vm416_vm1, %v396_v33, -1e+30 }
 0x128   : > { %v390_v35 = vpop.f32.mrf.mxu0  ;;  %v443_v36 = vsel %vm433_vm2, %v1814_v34, -inf }
 0x129   : > { %v1819_v37 = vsel %vm416_vm1, %v390_v35, -1e+30  ;;  %444 = vmax.xlane.f32.xlu2 %v443_v36  ;;  %v359_v36 = vld [vmem:[%s1770_s27 + $0x28] sm:$0xff] }
 0x12a   : > { %v437_v38 = vsel %vm433_vm2, %v1819_v37, -inf  ;;  %701 = vmatpush.msra.mxu1 %v359_v36  ;;  %1071 = vmatpush.msra.mxu3 %v359_v36 }
 0x12b   : > { %438 = vmax.xlane.f32.xlu0 %v437_v38 }
 0x12e   : > { %v399_v39 = vpop.f32.mrf.mxu2 }
 0x12f   : > { %v1824_v40 = vsel %vm416_vm1, %v399_v39, -1e+30  ;;  %v358_v39 = vld [vmem:[%s1770_s27 + $0x20] sm:$0xff] }
 0x130   : > { %v446_v41 = vsel %vm433_vm2, %v1824_v40, -inf  ;;  %v393_v42 = vpop.f32.mrf.mxu0  ;;  %702 = vmatpush.msra.mxu1 %v358_v39  ;;  %1072 = vmatpush.msra.mxu3 %v358_v39  ;;  %v554_v39 = vld [vmem:[#allocation3] sm:$0xff] }
 0x131   : > { %447 = vmax.xlane.f32.xlu1 %v446_v41  ;;  %v1829_v43 = vsel %vm416_vm1, %v393_v42, -1e+30  ;;  %v357_v41 = vld [vmem:[%s1770_s27 + $0x18] sm:$0xff]  ;;  %v356_v42 = vld [vmem:[%s1770_s27 + $0x10] sm:$0xff] }
 0x132   : > { %v440_v45 = vsel %vm433_vm2, %v1829_v43, -inf  ;;  %703 = vmatpush.msra.mxu1 %v357_v41  ;;  %1073 = vmatpush.msra.mxu3 %v357_v41 }
 0x134   : > { %704 = vmatpush.msra.mxu1 %v356_v42  ;;  %1074 = vmatpush.msra.mxu3 %v356_v42 }
 0x136   : > { %v402_v44 = vpop.f32.mrf.mxu2 }
 0x137   : > { %v1834_v46 = vsel %vm416_vm1, %v402_v44, -1e+30  ;;  %v355_v44 = vld [vmem:[%s1770_s27 + $0x8] sm:$0xff] }
 0x138   : > { %v449_v48 = vsel %vm433_vm2, %v1834_v46, -inf  ;;  %705 = vmatpush.msra.mxu1 %v355_v44  ;;  %1075 = vmatpush.msra.mxu3 %v355_v44 }
 0x139   : > { %441 = vmax.xlane.f32.xlu1 %v440_v45  ;;  %v354_v45 = vld [vmem:[%s1770_s27] sm:$0xff] }
 0x13a   : > { %706 = vmatpush.msra.mxu1 %v354_v45  ;;  %1076 = vmatpush.msra.mxu3 %v354_v45  ;;  %v556_v45 = vld [vmem:[#allocation3 + $0x10] sm:$0xff] }
 0x13e   : > { %v405_v47 = vpop.f32.mrf.mxu2 }
 0x13f   : > { %v1839_v49 = vsel %vm416_vm1, %v405_v47, -1e+30 }
 0x140   : > { %v452_v50 = vsel %vm433_vm2, %v1839_v49, -inf }
 0x141   : > { %453 = vmax.xlane.f32.xlu2 %v452_v50  ;;  %450 = vmax.xlane.f32.xlu1 %v449_v48 }
 0x146   : > { %v408_v51 = vpop.f32.mrf.mxu2 }
 0x147   : > { %v1844_v52 = vsel %vm416_vm1, %v408_v51, -1e+30 }
 0x148   : > { %v455_v53 = vsel %vm433_vm2, %v1844_v52, -inf }
 0x149   : > { %456 = vmax.xlane.f32.xlu0 %v455_v53 }
 0x196   : > { %v436_v56 = vpop.xlane.xlu0 %435 }
 0x197   : > { %v458_v57 = vmax.f32 %v1848_v55, %v436_v56 }
 0x199   : > { %748 = vst.msk [vmem:[#allocation2] sm:$0xff] %vm602_vm3, %v458_v57  ;;  %492 = vperm.xlu2 %1217, %v458_v57   ;;  %v466_v27 = vsub.f32 %v1848_v55, %v458_v57 }
 0x19b   : > { %v474_v29 = vmul.f32 1.442695, %v466_v27 }
 0x19c   : > { %v445_v59 = vpop.xlane.xlu2 %444 }
 0x19d   : > { %v461_v61 = vmax.f32 %v1852_v58, %v445_v59 }
 0x19e   : > { %v439_v62 = vpop.xlane.xlu0 %438 }
 0x19f   : > { %751 = vst.msk [vmem:[#allocation2 + $0x18] sm:$0xff] %vm602_vm3, %v461_v61  ;;  %v459_v63 = vmax.f32 %v426_v60, %v439_v62  ;;  %v469_v32 = vsub.f32 %v1852_v58, %v461_v61 }
 0x1a1   : > { %749 = vst.msk [vmem:[#allocation2 + $0x8] sm:$0xff] %vm602_vm3, %v459_v63  ;;  %497 = vperm.xlu0 %1218, %v459_v63   ;;  %v467_v20 = vsub.f32 %v426_v60, %v459_v63  ;;  %v480_v33 = vmul.f32 1.442695, %v469_v32 }
 0x1a3   : > { %v476_v23 = vmul.f32 1.442695, %v467_v20 }
 0x1a4   : > { %v448_v1 = vpop.xlane.xlu1 %447 }
 0x1a5   : > { %v462_v2 = vmax.f32 %v429_v0, %v448_v1 }
 0x1a7   : > { %752 = vst.msk [vmem:[#allocation2 + $0x20] sm:$0xff] %vm602_vm3, %v462_v2  ;;  %v470_v10 = vsub.f32 %v429_v0, %v462_v2 }
 0x1a9   : > { %v482_v15 = vmul.f32 1.442695, %v470_v10 }
 0x1ac   : > { %v442_v4 = vpop.xlane.xlu1 %441 }
 0x1ad   : > { %v460_v5 = vmax.f32 %v427_v3, %v442_v4 }
 0x1af   : > { %v468_v6 = vsub.f32 %v427_v3, %v460_v5  ;;  %750 = vst.msk [vmem:[#allocation2 + $0x10] sm:$0xff] %vm602_vm3, %v460_v5  ;;  %502 = vperm.xlu2 %1217, %v460_v5  }
 0x1b1   : > { %v478_v7 = vmul.f32 1.442695, %v468_v6 }
 0x1b3   : > { %1220 = vpow2.f32 %v478_v7 }
 0x1b4   : > { %v454_v11 = vpop.xlane.xlu2 %453  ;;  %v451_v12 = vpop.xlane.xlu1 %450  ;;  %1222 = vpow2.f32 %v482_v15 }
 0x1b5   : > { %v1864_v13 = vmax.f32 %v1859_v8, %v454_v11  ;;  %v1867_v14 = vmax.f32 %v1861_v9, %v451_v12  ;;  %1224 = vpow2.f32 %v476_v23 }
 0x1b6   : > { %1226 = vpow2.f32 %v474_v29 }
 0x1b7   : > { %v472_v16 = vsub.f32 %v1859_v8, %v1864_v13  ;;  %754 = vst.msk [vmem:[#allocation2 + $0x30] sm:$0xff] %vm602_vm3, %v1864_v13  ;;  %v471_v17 = vsub.f32 %v1861_v9, %v1867_v14  ;;  %522 = vperm.xlu2 %1217, %v1864_v13   ;;  %517 = vperm.xlu1 %1219, %v1867_v14   ;;  %1228 = vpow2.f32 %v480_v33  ;;  %v611_v9 = vld [vmem:[#allocation4 + $0x30] sm:$0xff] }
 0x1b8   : > { %753 = vst.msk [vmem:[#allocation2 + $0x28] sm:$0xff] %vm602_vm3, %v1867_v14 }
 0x1b9   : > { %v1881_v21 = vpop.eup %1220  ;;  %v486_v20 = vmul.f32 1.442695, %v472_v16  ;;  %v484_v13 = vmul.f32 1.442695, %v471_v17 }
 0x1ba   : > { %631 = vperm.xlu0 %1218, %v1881_v21   ;;  %v1895_v28 = vpop.eup %1222 }
 0x1bb   : > { %v1898_v30 = vpop.eup %1224 }
 0x1bc   : > { %v457_v24 = vpop.xlane.xlu0 %456  ;;  %v1902_v35 = vpop.eup %1226 }
 0x1bd   : > { %v1887_v25 = vmax.f32 %v1884_v22, %v457_v24  ;;  %v1906_v38 = vpop.eup %1228  ;;  %v562_v41 = vmul.f32 %v1902_v35, %v554_v39 }
 0x1bf   : > { %v473_v26 = vsub.f32 %v1884_v22, %v1887_v25  ;;  %755 = vst.msk [vmem:[#allocation2 + $0x38] sm:$0xff] %vm602_vm3, %v1887_v25  ;;  %527 = vperm.xlu2 %1217, %v1887_v25   ;;  %507 = vperm.xlu1 %1219, %v461_v61  }
 0x1c1   : > { %v488_v8 = vmul.f32 1.442695, %v473_v26 }
 0x1c2   : > { %641 = vperm.xlu0 %1218, %v1895_v28  }
 0x1c7   : > { %626 = vperm.xlu2 %1217, %v1898_v30   ;;  %512 = vperm.xlu1 %1219, %v462_v2  }
 0x1cf   : > { %621 = vperm.xlu1 %1219, %v1902_v35  }
 0x1d7   : > { %636 = vperm.xlu1 %1219, %v1906_v38  }
 0x1f3   : > { %v493_v47 = vpop.permute.xlu2 %492 }
 0x1f4   : > { %v530_v48 = vsub.f32 %v1809_v31, %v493_v47  ;;  %v564_v47 = vmul.f32 %v1881_v21, %v556_v45  ;;  %v557_v21 = vld [vmem:[#allocation3 + $0x18] sm:$0xff] }
 0x1f6   : > { %v538_v50 = vmul.f32 1.442695, %v530_v48 }
 0x1f8   : > { %1230 = vpow2.f32 %v538_v50 }
 0x1fe   : > { %v1231_v51 = vpop.eup %1230 }
 0x1ff   : > { %1047 = vmatmul.msk.f32.vlgmr.msra.gmra.mxu1 %vm433_vm2, %v1231_v51  ;;  %v570_v53 = vsel %vm433_vm2, %v1231_v51, 0.0  ;;  %v612_v51 = vld [vmem:[#allocation4] sm:$0xff] }
 0x200   : > { %571 = vadd.xlane.f32.xlu0 %v570_v53 }
 0x209   : > { %v503_v54 = vpop.permute.xlu2 %502 }
 0x20a   : > { %v532_v55 = vsub.f32 %v1829_v43, %v503_v54 }
 0x20c   : > { %v542_v56 = vmul.f32 1.442695, %v532_v55 }
 0x20e   : > { %1232 = vpow2.f32 %v542_v56  ;;  %v613_v56 = vld [vmem:[#allocation4 + $0x18] sm:$0xff] }
 0x211   : > { %v523_v62 = vpop.permute.xlu2 %522 }
 0x212   : > { %v536_v1 = vsub.f32 %v1839_v49, %v523_v62 }
 0x213   : > { %v498_v57 = vpop.permute.xlu0 %497 }
 0x214   : > { %v1233_v58 = vpop.eup %1232  ;;  %v531_v59 = vsub.f32 %v1819_v37, %v498_v57  ;;  %v550_v2 = vmul.f32 1.442695, %v536_v1  ;;  %v555_v1 = vld [vmem:[#allocation3 + $0x8] sm:$0xff] }
 0x215   : > { %v576_v60 = vsel %vm433_vm2, %v1233_v58, 0.0 }
 0x216   : > { %v540_v31 = vmul.f32 1.442695, %v531_v59  ;;  %577 = vadd.xlane.f32.xlu1 %v576_v60  ;;  %v559_v60 = vld [vmem:[#allocation3 + $0x28] sm:$0xff] }
 0x218   : > { %1234 = vpow2.f32 %v540_v31 }
 0x219   : > { %v528_v3 = vpop.permute.xlu2 %527 }
 0x21a   : > { %v537_v7 = vsub.f32 %v1844_v52, %v528_v3  ;;  %v563_v3 = vmul.f32 %v1898_v30, %v555_v1 }
 0x21e   : > { %v1235_v61 = vpop.eup %1234 }
 0x21f   : > { %1048 = vmatmul.msk.f32.gmra.mxu1 %vm433_vm2, %v1235_v61 }
 0x221   : > { %v627_v35 = vpop.permute.xlu2 %626 }
 0x222   : > { %v660_v53 = vmul.f32 %v627_v35, %v612_v51 }
 0x227   : > { %1049 = vmatmul.msk.f32.gmra.mxu1 %vm433_vm2, %v1233_v58 }
 0x229   : > { %v518_v63 = vpop.permute.xlu1 %517 }
 0x22a   : > { %v535_v43 = vsub.f32 %v1834_v46, %v518_v63  ;;  %v552_v46 = vmul.f32 1.442695, %v537_v7  ;;  %v565_v63 = vmul.f32 %v1906_v38, %v557_v21  ;;  %v560_v38 = vld [vmem:[#allocation3 + $0x30] sm:$0xff] }
 0x22c   : > { %v548_v0 = vmul.f32 1.442695, %v535_v43  ;;  %v632_v32 = vpop.permute.xlu0 %631 }
 0x22d   : > { %v661_v57 = vmul.f32 %v632_v32, %v613_v56 }
 0x22e   : > { %1236 = vpow2.f32 %v548_v0 }
 0x22f   : > { %1238 = vpow2.f32 %v550_v2  ;;  %v558_v2 = vld [vmem:[#allocation3 + $0x20] sm:$0xff] }
 0x231   : > { %v508_v37 = vpop.permute.xlu1 %507 }
 0x232   : > { %v533_v4 = vsub.f32 %v1814_v34, %v508_v37  ;;  %v614_v37 = vld [vmem:[#allocation4 + $0x10] sm:$0xff] }
 0x234   : > { %v1237_v5 = vpop.eup %1236  ;;  %v544_v6 = vmul.f32 1.442695, %v533_v4  ;;  %v642_v36 = vpop.permute.xlu0 %641  ;;  %v566_v4 = vmul.f32 %v1895_v28, %v558_v2 }
 0x235   : > { %1052 = vmatmul.msk.f32.vlgmr.msra.gmra.mxu3 %vm433_vm2, %v1237_v5  ;;  %v585_v10 = vsel %vm433_vm2, %v1237_v5, 0.0  ;;  %v1239_v12 = vpop.eup %1238 }
 0x236   : > { %1240 = vpow2.f32 %v544_v6  ;;  %586 = vadd.xlane.f32.xlu1 %v585_v10  ;;  %v588_v24 = vsel %vm433_vm2, %v1239_v12, 0.0 }
 0x237   : > { %1242 = vpow2.f32 %v552_v46 }
 0x239   : > { %v513_v11 = vpop.permute.xlu1 %512 }
 0x23a   : > { %v534_v49 = vsub.f32 %v1824_v40, %v513_v11  ;;  %v573_v40 = vsel %vm433_vm2, %v1235_v61, 0.0 }
 0x23c   : > { %v1241_v15 = vpop.eup %1240  ;;  %v546_v18 = vmul.f32 1.442695, %v534_v49 }
 0x23d   : > { %1050 = vmatmul.msk.f32.gmra.mxu1 %vm433_vm2, %v1241_v15  ;;  %1053 = vmatmul.msk.f32.gmra.mxu3 %vm433_vm2, %v1239_v12  ;;  %v579_v34 = vsel %vm433_vm2, %v1241_v15, 0.0  ;;  %v1243_v52 = vpop.eup %1242  ;;  %v561_v15 = vld [vmem:[#allocation3 + $0x38] sm:$0xff] }
 0x23e   : > { %1244 = vpow2.f32 %v546_v18  ;;  %580 = vadd.xlane.f32.xlu2 %v579_v34  ;;  %v591_v27 = vsel %vm433_vm2, %v1243_v52, 0.0  ;;  %v615_v18 = vld [vmem:[#allocation4 + $0x8] sm:$0xff] }
 0x23f   : > { %1246 = vpow2.f32 %v486_v20  ;;  %v617_v34 = vld [vmem:[#allocation4 + $0x28] sm:$0xff] }
 0x240   : > { %1248 = vpow2.f32 %v488_v8 }
 0x241   : > { %1250 = vpow2.f32 %v484_v13  ;;  %v622_v25 = vpop.permute.xlu1 %621 }
 0x242   : > { %v659_v14 = vmul.f32 %v622_v25, %v611_v9 }
 0x244   : > { %v1245_v19 = vpop.eup %1244 }
 0x245   : > { %1051 = vmatmul.msk.f32.gmra.mxu1 %vm433_vm2, %v1245_v19  ;;  %1054 = vmatmul.msk.f32.gmra.mxu3 %vm433_vm2, %v1243_v52  ;;  %v582_v23 = vsel %vm433_vm2, %v1245_v19, 0.0  ;;  %v1941_v29 = vpop.eup %1246  ;;  %v663_v52 = vmul.f32 %v642_v36, %v615_v18 }
 0x246   : > { %574 = vadd.xlane.f32.xlu2 %v573_v40  ;;  %583 = vadd.xlane.f32.xlu0 %v582_v23  ;;  %v1950_v16 = vpop.eup %1248  ;;  %v568_v30 = vmul.f32 %v1941_v29, %v560_v38 }
 0x247   : > { %v1251_v33 = vpop.eup %1250  ;;  %v569_v28 = vmul.f32 %v1950_v16, %v561_v15 }
 0x248   : > { %v567_v31 = vmul.f32 %v1251_v33, %v559_v60 }
 0x249   : > { %v637_v44 = vpop.permute.xlu1 %636 }
 0x24a   : > { %v662_v5 = vmul.f32 %v637_v44, %v614_v37 }
 0x24e   : > { %589 = vadd.xlane.f32.xlu2 %v588_v24  ;;  %592 = vadd.xlane.f32.xlu0 %v591_v27 }
 0x24f   : > { %651 = vperm.xlu1 %1219, %v1941_v29   ;;  %v616_v29 = vld [vmem:[#allocation4 + $0x20] sm:$0xff] }
 0x262   : > { %656 = vperm.xlu0 %1218, %v1950_v16  }
 0x266   : > { %646 = vperm.xlu2 %1217, %v1251_v33  }
 0x273   : > { %v572_v42 = vpop.xlane.xlu0 %571 }
 0x274   : > { %v594_v22 = vadd.f32 %v572_v42, %v562_v41  ;;  %v618_v41 = vld [vmem:[#allocation4 + $0x38] sm:$0xff] }
 0x276   : > { %603 = vst.msk [vmem:[#allocation3] sm:$0xff] %vm602_vm3, %v594_v22 }
 0x27c   : > { %v708_v17 = vpop.f32.mrf.mxu1 }
 0x27d   : > { %v732_v26 = vadd.f32 %v708_v17, %v659_v14 }
 0x27f   : > { %740 = vst [vmem:[#allocation4 + $0x30] sm:$0xff] %v732_v26 }
 0x289   : > { %v578_v48 = vpop.xlane.xlu1 %577 }
 0x28a   : > { %v596_v50 = vadd.f32 %v578_v48, %v564_v47 }
 0x28c   : > { %605 = vst.msk [vmem:[#allocation3 + $0x10] sm:$0xff] %vm602_vm3, %v596_v50 }
 0x29c   : > { %v711_v54 = vpop.f32.mrf.mxu1 }
 0x29d   : > { %v733_v55 = vadd.f32 %v711_v54, %v660_v53 }
 0x29f   : > { %741 = vst [vmem:[#allocation4] sm:$0xff] %v733_v55 }
 0x2a4   : > { %v714_v58 = vpop.f32.mrf.mxu1 }
 0x2a5   : > { %v734_v59 = vadd.f32 %v714_v58, %v661_v57 }
 0x2a7   : > { %742 = vst [vmem:[#allocation4 + $0x18] sm:$0xff] %v734_v59 }
 0x2a9   : > { %v587_v61 = vpop.xlane.xlu1 %586 }
 0x2aa   : > { %v599_v62 = vadd.f32 %v587_v61, %v567_v31 }
 0x2ac   : > { %608 = vst.msk [vmem:[#allocation3 + $0x28] sm:$0xff] %vm602_vm3, %v599_v62 }
 0x2b1   : > { %v581_v43 = vpop.xlane.xlu2 %580 }
 0x2b2   : > { %v597_v0 = vadd.f32 %v581_v43, %v565_v63 }
 0x2b4   : > { %606 = vst.msk [vmem:[#allocation3 + $0x18] sm:$0xff] %vm602_vm3, %v597_v0 }
 0x2b8   : > { %v723_v10 = vpop.f32.mrf.mxu3 }
 0x2b9   : > { %v575_v6 = vpop.xlane.xlu2 %574  ;;  %v584_v7 = vpop.xlane.xlu0 %583 }
 0x2ba   : > { %v595_v46 = vadd.f32 %v575_v6, %v563_v3  ;;  %v598_v11 = vadd.f32 %v584_v7, %v566_v4  ;;  %v717_v49 = vpop.f32.mrf.mxu1 }
 0x2bb   : > { %v735_v12 = vadd.f32 %v717_v49, %v662_v5 }
 0x2bc   : > { %604 = vst.msk [vmem:[#allocation3 + $0x8] sm:$0xff] %vm602_vm3, %v595_v46 }
 0x2bd   : > { %607 = vst.msk [vmem:[#allocation3 + $0x20] sm:$0xff] %vm602_vm3, %v598_v11 }
 0x2be   : > { %743 = vst [vmem:[#allocation4 + $0x10] sm:$0xff] %v735_v12 }
 0x2c0   : > { %v726_v32 = vpop.f32.mrf.mxu3 }
 0x2c1   : > { %v590_v19 = vpop.xlane.xlu2 %589  ;;  %v593_v20 = vpop.xlane.xlu0 %592 }
 0x2c2   : > { %v600_v40 = vadd.f32 %v590_v19, %v568_v30  ;;  %v601_v23 = vadd.f32 %v593_v20, %v569_v28  ;;  %v652_v24 = vpop.permute.xlu1 %651  ;;  %v720_v27 = vpop.f32.mrf.mxu1 }
 0x2c3   : > { %v665_v8 = vmul.f32 %v652_v24, %v617_v34  ;;  %v736_v13 = vadd.f32 %v720_v27, %v663_v52 }
 0x2c4   : > { %609 = vst.msk [vmem:[#allocation3 + $0x30] sm:$0xff] %vm602_vm3, %v600_v40 }
 0x2c5   : > { %610 = vst.msk [vmem:[#allocation3 + $0x38] sm:$0xff] %vm602_vm3, %v601_v23  ;;  %v738_v33 = vadd.f32 %v726_v32, %v665_v8 }
 0x2c6   : > { %744 = vst [vmem:[#allocation4 + $0x8] sm:$0xff] %v736_v13 }
 0x2c7   : > { %746 = vst [vmem:[#allocation4 + $0x28] sm:$0xff] %v738_v33 }
 0x2c8   : > { %v729_v25 = vpop.f32.mrf.mxu3 }
 0x2c9   : > { %v647_v16 = vpop.permute.xlu2 %646 }
 0x2ca   : > { %v664_v39 = vmul.f32 %v647_v16, %v616_v29 }
 0x2cc   : > { %v737_v36 = vadd.f32 %v723_v10, %v664_v39 }
 0x2ce   : > { %745 = vst [vmem:[#allocation4 + $0x20] sm:$0xff] %v737_v36 }
 0x2d4   : > { %v657_v42 = vpop.permute.xlu0 %656 }
 0x2d5   : > { %v666_v22 = vmul.f32 %v657_v42, %v618_v41  ;;  %759 = sbr.rel (%p1055_p6) target bundleno = 879 (0x36f), region = 52 }
 0x2d7   : > { %v739_v9 = vadd.f32 %v729_v25, %v666_v22 }
 0x2d9   : > { %747 = vst [vmem:[#allocation4 + $0x38] sm:$0xff] %v739_v9 }
 0x2da   : > { %v762_v14 = vld [vmem:[#allocation3 + $0x10] sm:$0xff]  ;;  %v760_v17 = vld [vmem:[#allocation3] sm:$0xff]  ;;  %v763_v26 = vld [vmem:[#allocation3 + $0x18] sm:$0xff]  ;;  %v1510_v44 = vmov 0  }
 0x2db   : > { %1253 = vset.pattern.permute.xlu1 %v1510_v44  ;;  %1252 = vset.pattern.permute.xlu0 %v1510_v44  ;;  %1255 = vrcp.f32 %v762_v14  ;;  %v761_v45 = vld [vmem:[#allocation3 + $0x8] sm:$0xff]  ;;  %v764_v47 = vld [vmem:[#allocation3 + $0x20] sm:$0xff]  ;;  %v767_v50 = vld [vmem:[#allocation3 + $0x38] sm:$0xff] }
 0x2dc   : > { %1257 = vrcp.f32 %v760_v17  ;;  %1254 = vset.pattern.permute.xlu2 %v1510_v44  ;;  %v765_v48 = vld [vmem:[#allocation3 + $0x28] sm:$0xff]  ;;  %v766_v35 = vld [vmem:[#allocation3 + $0x30] sm:$0xff]  ;;  %v805_v52 = vld [vmem:[#allocation4 + $0x20] sm:$0xff] }
 0x2dd   : > { %1259 = vrcp.f32 %v763_v26  ;;  %v804_v30 = vld [vmem:[#allocation4 + $0x8] sm:$0xff]  ;;  %v802_v40 = vld [vmem:[#allocation4 + $0x18] sm:$0xff]  ;;  %v800_v23 = vld [vmem:[#allocation4 + $0x30] sm:$0xff] }
 0x2de   : > { %1261 = vrcp.f32 %v761_v45  ;;  %v803_v32 = vld [vmem:[#allocation4 + $0x10] sm:$0xff]  ;;  %v801_v33 = vld [vmem:[#allocation4] sm:$0xff]  ;;  %v806_v42 = vld [vmem:[#allocation4 + $0x28] sm:$0xff] }
 0x2df   : > { %1263 = vrcp.f32 %v764_v47 }
 0x2e0   : > { %1265 = vrcp.f32 %v765_v48  ;;  %v807_v41 = vld [vmem:[#allocation4 + $0x38] sm:$0xff] }
 0x2e1   : > { %v1256_v51 = vpop.eup %1255  ;;  %1267 = vrcp.f32 %v767_v50 }
 0x2e2   : > { %v1258_v53 = vpop.eup %1257  ;;  %v778_v54 = vmul.f32 %v1256_v51, %v762_v14  ;;  %1269 = vrcp.f32 %v766_v35 }
 0x2e3   : > { %v1260_v55 = vpop.eup %1259  ;;  %v776_v56 = vmul.f32 %v1258_v53, %v760_v17 }
 0x2e4   : > { %v1262_v57 = vpop.eup %1261  ;;  %v786_v58 = vsub.f32 2.0, %v778_v54  ;;  %v779_v59 = vmul.f32 %v1260_v55, %v763_v26 }
 0x2e5   : > { %v784_v60 = vsub.f32 2.0, %v776_v56  ;;  %v777_v31 = vmul.f32 %v1262_v57, %v761_v45  ;;  %v1264_v62 = vpop.eup %1263 }
 0x2e6   : > { %v794_v61 = vmul.f32 %v1256_v51, %v786_v58  ;;  %v1266_v63 = vpop.eup %1265  ;;  %v787_v43 = vsub.f32 2.0, %v779_v59  ;;  %v780_v0 = vmul.f32 %v1264_v62, %v764_v47 }
 0x2e7   : > { %v792_v21 = vmul.f32 %v1258_v53, %v784_v60  ;;  %v1268_v1 = vpop.eup %1267  ;;  %v785_v2 = vsub.f32 2.0, %v777_v31  ;;  %v781_v4 = vmul.f32 %v1266_v63, %v765_v48 }
 0x2e8   : > { %820 = vperm.xlu1 %1253, %v794_v61   ;;  %v1270_v37 = vpop.eup %1269  ;;  %v788_v3 = vsub.f32 2.0, %v780_v0  ;;  %v795_v5 = vmul.f32 %v1260_v55, %v787_v43  ;;  %v783_v6 = vmul.f32 %v1268_v1, %v767_v50 }
 0x2e9   : > { %810 = vperm.xlu0 %1252, %v792_v21   ;;  %v793_v10 = vmul.f32 %v1262_v57, %v785_v2  ;;  %v782_v46 = vmul.f32 %v1270_v37, %v766_v35  ;;  %v789_v11 = vsub.f32 2.0, %v781_v4 }
 0x2ea   : > { %v796_v7 = vmul.f32 %v1264_v62, %v788_v3  ;;  %v791_v49 = vsub.f32 2.0, %v783_v6 }
 0x2eb   : > { %v790_v12 = vsub.f32 2.0, %v782_v46  ;;  %v797_v38 = vmul.f32 %v1266_v63, %v789_v11 }
 0x2ec   : > { %830 = vperm.xlu2 %1254, %v796_v7   ;;  %v799_v15 = vmul.f32 %v1268_v1, %v791_v49 }
 0x2ed   : > { %v798_v18 = vmul.f32 %v1270_v37, %v790_v12 }
 0x2f0   : > { %825 = vperm.xlu1 %1253, %v795_v5  }
 0x2f1   : > { %815 = vperm.xlu0 %1252, %v793_v10  }
 0x2f4   : > { %835 = vperm.xlu2 %1254, %v797_v38  }
 0x2f8   : > { %845 = vperm.xlu1 %1253, %v799_v15  }
 0x2f9   : > { %840 = vperm.xlu0 %1252, %v798_v18  }
 0x346   : > { %v831_v28 = vpop.permute.xlu2 %830 }
 0x347   : > { %v852_v34 = vmul.f32 %v831_v28, %v804_v30 }
 0x349   : > { %860 = vst [vmem:[%s1772_s19 + $0x20] sm:$0xff] %v852_v34 }
 0x34e   : > { %v836_v19 = vpop.permute.xlu2 %835 }
 0x34f   : > { %v853_v20 = vmul.f32 %v836_v19, %v805_v52 }
 0x351   : > { %861 = vst [vmem:[%s1772_s19 + $0x28] sm:$0xff] %v853_v20 }
 0x35a   : > { %v821_v24 = vpop.permute.xlu1 %820 }
 0x35b   : > { %v850_v27 = vmul.f32 %v821_v24, %v802_v40  ;;  %v811_v8 = vpop.permute.xlu0 %810 }
 0x35c   : > { %v848_v13 = vmul.f32 %v811_v8, %v800_v23 }
 0x35d   : > { %858 = vst [vmem:[%s1772_s19 + $0x10] sm:$0xff] %v850_v27 }
 0x35e   : > { %856 = vst [vmem:[%s1772_s19] sm:$0xff] %v848_v13 }
 0x362   : > { %v826_v29 = vpop.permute.xlu1 %825 }
 0x363   : > { %v851_v16 = vmul.f32 %v826_v29, %v803_v32  ;;  %v816_v39 = vpop.permute.xlu0 %815 }
 0x364   : > { %v849_v36 = vmul.f32 %v816_v39, %v801_v33 }
 0x365   : > { %859 = vst [vmem:[%s1772_s19 + $0x18] sm:$0xff] %v851_v16 }
 0x366   : > { %857 = vst [vmem:[%s1772_s19 + $0x8] sm:$0xff] %v849_v36 }
 0x36a   : > { %v846_v22 = vpop.permute.xlu1 %845 }
 0x36b   : > { %v855_v25 = vmul.f32 %v846_v22, %v807_v41  ;;  %v841_v9 = vpop.permute.xlu0 %840 }
 0x36c   : > { %v854_v14 = vmul.f32 %v841_v9, %v806_v42 }
 0x36d   : > { %863 = vst [vmem:[%s1772_s19 + $0x38] sm:$0xff] %v855_v25 }
 0x36e   : > { %862 = vst [vmem:[%s1772_s19 + $0x30] sm:$0xff] %v854_v14 }
 0x36f PF: > { %s2112_s4 = sld [smem:[#allocation19_spill]]  ;;  %s879_s12 = sshll.u32 %s1772_s19, 4  ;;  %s880_s12 = int_to_ptr.vmem [resolvable:$true] %s879_s12 }
 0x370   : > { %s2113_s30 = sld [smem:[#allocation20_spill]]  ;;  %s865_s3 = scalar_lea.sflag [#allocation7], %s1752_s22 }
 0x371   : > { %s2115_s11 = sld [smem:[#allocation32_spill]] }
 0x375   : > { %s1057_s1 = sshll.u32 %s2112_s4, 3 }
 0x376   : > { %s1080_s16 = smul.u32 24, %s2113_s30 }
 0x377   : > { %s1381_s19 = scalar_lea.hbm %s2115_s11, 384 }
 0x378   : > { %s876_s5 = sadd.s32 %s1080_s16, %s1057_s1 }
 0x379   : > { %s1058_s10 = sshll.u32 %s876_s5, 3 }
 0x37a   : > { %s878_s9 = scalar_lea.hbm %s2115_s11, %s1058_s10 }
 0x37b   : > { %s881_s29 = sshll.u32 %s878_s9, 4  ;;  %s882_s29 = int_to_ptr.hbm [resolvable:$true] %s881_s29 }
 0x37c   : > { %s1375_s8 = sshra.s32 %s882_s29, 4  ;;  %s1376_s8 = int_to_ptr.hbm [resolvable:$true] %s1375_s8 }
 0x37d   : > { %s1377_s6 = scalar_lea.hbm %s1376_s8, 64  ;;  %p1382_p5 = scmp.lt.s32.totalorder %s1376_s8, %s2115_s11 }
 0x37e   : > { %p1378_p8 = scmp.ne.s32.totalorder %s1376_s8, %s1377_s6  ;;  %p1383_p9 = scmp.lt.s32.totalorder %s1381_s19, %s1377_s6 }
 0x380   : > { %p1379_p11 = pnand %p1378_p8, %p1701_p0  ;;  %p1384_p1 = por %p1383_p9, %p1382_p5 }
 0x382   : > { %p1380_p4 = pneg %p1379_p11 }
 0x384   : > { %p1385_p10 = pnand %p1384_p1, %p1380_p4 }
 0x386   : > { %1388 = shalt.err (!%p1385_p10)
}
 0x387   : > { %s1511_s22 = smov 128   ;;  %s1512_s4 = smov 8  }
 0x388   : > { %1087 = dma.vmem_to_hbm [thread:$0]  (%p1701_p0), %s880_s12, 1024, %s882_s29, %s865_s3, %s1511_s22, %s1511_s22, %s1512_s4  }
 0x389 PF: > { %s2116_s30 = sld [smem:[#allocation16_spill]]  ;;  %p1104_p12 = scmp.ge.s32.totalorder %s1503_s24, 2 }
 0x38b   : > { %p1100_p3 = pnand %p1104_p12, %p1712_p2 }
 0x38d   : > { %p1101_p13 = pneg %p1100_p3 }
 0x38f   : > { %s896_s16 = sand.u32 1, %s2116_s30  }
 0x390   : > { %s897_s5 = scalar_lea.sflag [#allocation7], %s896_s16 }
 0x391   : > { %1450 = dma.done.wait (%p1101_p13), %s897_s5, 1024  }
 0x392   : > { %1452 = vsyncadd (%p1101_p13), %s897_s5, 4294966272  ;;  %s22_s24 = sadd.s32 1, %s1503_s24   ;;  %s2119_s12 = sld [smem:[#allocation15_spill]] }
 0x393   : > { %p1999_p7 = scmp.ge.s32.totalorder %s22_s24, 20   ;;  %s2120_s7 = sld [smem:[#allocation17_spill]] }
 0x394   : > { %s2121_s28 = smov %s1724_s15  ;;  %s2122_s19 = sld [smem:[#allocation21_spill]] }
 0x395   : > { %s2123_s22 = sld [smem:[#allocation26_spill]]  ;;  %s2125_s13 = smov %s1463_s14 }
 0x396   : > { %s2124_s9 = sld [smem:[#allocation28_spill]]  ;;  %s2126_s14 = smov %s1729_s25 }
 0x397   : > { %s2128_s16 = smov %s1475_s17  ;;  %s2129_s17 = smov %s2121_s28 }
 0x398   : > { %s2130_s18 = smov %s1491_s21  ;;  %s2131_s20 = smov %s1499_s23 }
 0x399   : > { %s2127_s15 = smov %s2120_s7  ;;  %s2132_s21 = smov %s2135_s26 }
 0x39a   :  { %21 = sbr.rel (!%p1999_p7) target bundleno = 16 (0x10), region = 109 }
 0x39c   : > { %s2133_s23 = smov %s2124_s9 }
 0x39f   :  { %903 = vsyncpa [#allocation6], 1 }
 0x3a0   :  { %905 = vsyncpa [#allocation6 + $0x1], 1 }
 0x3a1   :  { %906 = vsyncpa [#allocation9], 1 }
 0x3a2   :  { %908 = vsyncpa [#allocation9 + $0x1], 1 }
 0x3a3   :  { %909 = vsyncpa [#allocation7], 1 }
 0x3a4   :  { %911 = vsyncpa [#allocation7 + $0x1], 1 }

</bundles_post_ra>
